<compile_context>
chip_gen: v7x
topology: tpu7x:2x2x1
jax: 0.10.0
libtpu: 0.0.40
codegen_flags: <defaults>
</compile_context>

<pallas_src>
import functools

import jax
import jax.numpy as jnp
from jax.experimental import pallas as pl
from jax.experimental.pallas import tpu as pltpu  # noqa: F401  (TPU backend)


# ---------------------------------------------------------------------------
# Helpers
# ---------------------------------------------------------------------------
def _round_up(x, m):
    return ((x + m - 1) // m) * m


def _pad2d(x, rows, cols):
    r, c = x.shape
    return jnp.pad(x.astype(jnp.float32), ((0, rows - r), (0, cols - c)))


# ---------------------------------------------------------------------------
# Fused Pallas kernel: 3x SAGEConv('mean') + mean_nodes + Linear classifier
# ---------------------------------------------------------------------------
def _fused_sage_kernel(
    a_ref, h_ref,
    ws0_ref, wn0_ref, b0_ref,
    ws1_ref, wn1_ref, b1_ref,
    ws2_ref, wn2_ref, b2_ref,
    wc_ref, bc_ref,
    h_out_ref, feat_out_ref, logits_out_ref,
    *, n_real,
):
    a = a_ref[...]
    h = h_ref[...]

    layers = (
        (ws0_ref, wn0_ref, b0_ref, True),
        (ws1_ref, wn1_ref, b1_ref, True),
        (ws2_ref, wn2_ref, b2_ref, False),
    )
    for ws_r, wn_r, b_r, relu in layers:
        ws = ws_r[...]
        wn = wn_r[...]
        b = b_r[...]
        if wn.shape[1] <= h.shape[1]:
            # A @ (H @ W_neigh): cheaper N^2 term when f_out <= f_in.
            h_neigh = jnp.dot(
                a,
                jnp.dot(h, wn, preferred_element_type=jnp.float32),
                preferred_element_type=jnp.float32,
            )
        else:
            h_neigh = jnp.dot(
                jnp.dot(a, h, preferred_element_type=jnp.float32),
                wn,
                preferred_element_type=jnp.float32,
            )
        h = jnp.dot(h, ws, preferred_element_type=jnp.float32) + h_neigh + b
        if relu:
            h = jnp.maximum(h, 0.0)
        # TODO(synk): training-mode dropout (p=0.5) not implemented; inference path only.

    h_out_ref[...] = h.astype(h_out_ref.dtype)

    # dgl.mean_nodes over the real (unpadded) nodes only.
    n_pad = h.shape[0]
    row_ids = jax.lax.broadcasted_iota(jnp.int32, (n_pad, 1), 0)
    h_masked = jnp.where(row_ids < n_real, h, 0.0)
    mean_feat = jnp.sum(h_masked, axis=0, keepdims=True) * (1.0 / float(n_real))
    feat_out_ref[...] = mean_feat.astype(feat_out_ref.dtype)

    logits = (
        jnp.dot(mean_feat, wc_ref[...], preferred_element_type=jnp.float32)
        + bc_ref[...]
    )
    logits_out_ref[...] = logits.astype(logits_out_ref.dtype)


# ---------------------------------------------------------------------------
# Wrapper: pad to TPU-friendly shapes, call the fused kernel, slice outputs
# ---------------------------------------------------------------------------
def sage_forward(params, a_norm, feat):
    n = feat.shape[0]
    f_in = feat.shape[1]
    layers = params["layers"]
    hid = layers[0]["w_self"].shape[1]
    n_cls = params["cls_w"].shape[1]

    n_pad = max(_round_up(n, 8), 8)
    f_in_pad = _round_up(f_in, 128)
    hid_pad = _round_up(hid, 128)
    cls_pad = _round_up(n_cls, 128)

    # zero-pad graph, features, weights (zero padding is exact: padded feature
    # columns are zero, padded A rows/cols are zero, padded bias entries zero)
    a_p = _pad2d(a_norm, n_pad, n_pad)
    h_p = _pad2d(feat, n_pad, f_in_pad)

    padded_weights = []
    in_dims = [f_in_pad, hid_pad, hid_pad]
    for lp, din in zip(layers, in_dims):
        padded_weights += [
            _pad2d(lp["w_self"], din, hid_pad),
            _pad2d(lp["w_neigh"], din, hid_pad),
            _pad2d(lp["bias"], 1, hid_pad),
        ]
    wc_p = _pad2d(params["cls_w"], hid_pad, cls_pad)
    bc_p = _pad2d(params["cls_b"], 1, cls_pad)

    inputs = [a_p, h_p] + padded_weights + [wc_p, bc_p]
    in_specs = [pl.BlockSpec(x.shape, lambda: (0, 0)) for x in inputs]

    # advisory cost estimate (per-layer: self + neigh matmuls + aggregation)
    flops = 0
    d = f_in_pad
    for _ in range(3):
        flops += 2 * n_pad * n_pad * hid_pad + 4 * n_pad * d * hid_pad
        d = hid_pad
    flops += 2 * hid_pad * cls_pad
    bytes_accessed = 4 * sum(int(x.size) for x in inputs)
    bytes_accessed += 4 * (n_pad * hid_pad + hid_pad + cls_pad)

    kernel = functools.partial(_fused_sage_kernel, n_real=n)

    h_out, feat_out, logits = pl.pallas_call(
        kernel,
        out_shape=(
            jax.ShapeDtypeStruct((n_pad, hid_pad), jnp.float32),
            jax.ShapeDtypeStruct((1, hid_pad), jnp.float32),
            jax.ShapeDtypeStruct((1, cls_pad), jnp.float32),
        ),
        in_specs=in_specs,
        out_specs=(
            pl.BlockSpec((n_pad, hid_pad), lambda: (0, 0)),
            pl.BlockSpec((1, hid_pad), lambda: (0, 0)),
            pl.BlockSpec((1, cls_pad), lambda: (0, 0)),
        ),
        cost_estimate=pl.CostEstimate(
            flops=int(flops), transcendentals=0, bytes_accessed=int(bytes_accessed)
        ),
    )(*inputs)
    # TODO(synk): for very large N (A_norm exceeding VMEM) a row-tiled / K-reduction
    # grid variant with bf16 MXU inputs would be needed; at module-typical graph
    # sizes the whole graph fits in VMEM and one fused call is optimal.

    out = logits[:, :n_cls]
    out_feat = feat_out[:, :hid]
    h = h_out[:n, :hid]
    return out, out_feat, h


# ---------------------------------------------------------------------------
# Parameters + pure-JAX reference
# ---------------------------------------------------------------------------
def init_sage_params(key, base_dim, n_hidden, n_classes):
    dims = [(base_dim, n_hidden), (n_hidden, n_hidden), (n_hidden, n_hidden)]
    params = {"layers": []}
    for fin, fout in dims:
        k_s, k_n, key = jax.random.split(key, 3)
        scale = 1.0 / jnp.sqrt(fin)
        params["layers"].append(
            {
                "w_self": jax.random.normal(k_s, (fin, fout), jnp.float32) * scale,
                "w_neigh": jax.random.normal(k_n, (fin, fout), jnp.float32) * scale,
                "bias": jnp.zeros((1, fout), jnp.float32),
            }
        )
    k_c, key = jax.random.split(key)
    params["cls_w"] = jax.random.normal(
        k_c, (n_hidden, n_classes), jnp.float32
    ) * (1.0 / jnp.sqrt(n_hidden))
    params["cls_b"] = jnp.zeros((1, n_classes), jnp.float32)
    return params


def sage_forward_ref(params, a_norm, feat):
    h = feat
    n_layers = len(params["layers"])
    for l, lp in enumerate(params["layers"]):
        h = h @ lp["w_self"] + (a_norm @ h) @ lp["w_neigh"] + lp["bias"]
        if l != n_layers - 1:
            h = jnp.maximum(h, 0.0)
    out_feat = jnp.mean(h, axis=0, keepdims=True)
    out = out_feat @ params["cls_w"] + params["cls_b"]
    return out, out_feat, h


# ---------------------------------------------------------------------------
if __name__ == "__main__":
    N = 16            # nodes in the (single) graph
    BASE_DIM = 128    # input feature dim (small version of base_dim=256)
    N_HIDDEN = 64
    N_CLASSES = 2

    key = jax.random.PRNGKey(0)
    k_feat, k_adj, k_param = jax.random.split(key, 3)

    # node features
    feat = jax.random.normal(k_feat, (N, BASE_DIM), jnp.float32)

    # deterministic random graph (no self loops), row-normalized for 'mean' agg
    adj = (jax.random.uniform(k_adj, (N, N)) < 0.3).astype(jnp.float32)
    adj = adj * (1.0 - jnp.eye(N, dtype=jnp.float32))
    deg = jnp.sum(adj, axis=1, keepdims=True)
    a_norm = jnp.where(deg > 0, adj / jnp.maximum(deg, 1.0), 0.0)

    params = init_sage_params(k_param, BASE_DIM, N_HIDDEN, N_CLASSES)

    out, out_feat, h = sage_forward(params, a_norm, feat)
    jax.block_until_ready((out, out_feat, h))

    # correctness check against a pure-JAX reference
    out_r, out_feat_r, h_r = sage_forward_ref(params, a_norm, feat)
    assert jnp.allclose(out, out_r, rtol=1e-4, atol=1e-4)
    assert jnp.allclose(out_feat, out_feat_r, rtol=1e-4, atol=1e-4)
    assert jnp.allclose(h, h_r, rtol=1e-4, atol=1e-4)

    assert out.shape == (1, N_CLASSES)
    assert out_feat.shape == (1, N_HIDDEN)
    assert h.shape == (N, N_HIDDEN)

    print("KERNEL_OK")
</pallas_src>

<mosaic_0001>
module attributes {stable_mosaic.version = 11 : i64} {
  func.func @_fused_sage_kernel(%arg0: memref<16x16xf32, #tpu.memory_space<vmem>>, %arg1: memref<16x128xf32, #tpu.memory_space<vmem>>, %arg2: memref<128x128xf32, #tpu.memory_space<vmem>>, %arg3: memref<128x128xf32, #tpu.memory_space<vmem>>, %arg4: memref<1x128xf32, #tpu.memory_space<vmem>>, %arg5: memref<128x128xf32, #tpu.memory_space<vmem>>, %arg6: memref<128x128xf32, #tpu.memory_space<vmem>>, %arg7: memref<1x128xf32, #tpu.memory_space<vmem>>, %arg8: memref<128x128xf32, #tpu.memory_space<vmem>>, %arg9: memref<128x128xf32, #tpu.memory_space<vmem>>, %arg10: memref<1x128xf32, #tpu.memory_space<vmem>>, %arg11: memref<128x128xf32, #tpu.memory_space<vmem>>, %arg12: memref<1x128xf32, #tpu.memory_space<vmem>>, %arg13: memref<16x128xf32, #tpu.memory_space<vmem>>, %arg14: memref<1x128xf32, #tpu.memory_space<vmem>>, %arg15: memref<1x128xf32, #tpu.memory_space<vmem>>) attributes {dimension_semantics = [], scalar_prefetch = 0 : i64, scratch_operands = 0 : i64, tpu.core_type = #tpu.core_type<tc>} {
    %c0 = arith.constant 0 : index
    %c0_0 = arith.constant 0 : index
    %0 = vector.load %arg0[%c0, %c0_0] : memref<16x16xf32, #tpu.memory_space<vmem>>, vector<16x16xf32>
    %c0_1 = arith.constant 0 : index
    %c0_2 = arith.constant 0 : index
    %1 = vector.load %arg1[%c0_1, %c0_2] : memref<16x128xf32, #tpu.memory_space<vmem>>, vector<16x128xf32>
    %c0_3 = arith.constant 0 : index
    %c0_4 = arith.constant 0 : index
    %2 = vector.load %arg2[%c0_3, %c0_4] : memref<128x128xf32, #tpu.memory_space<vmem>>, vector<128x128xf32>
    %c0_5 = arith.constant 0 : index
    %c0_6 = arith.constant 0 : index
    %3 = vector.load %arg3[%c0_5, %c0_6] : memref<128x128xf32, #tpu.memory_space<vmem>>, vector<128x128xf32>
    %c0_7 = arith.constant 0 : index
    %c0_8 = arith.constant 0 : index
    %4 = vector.load %arg4[%c0_7, %c0_8] : memref<1x128xf32, #tpu.memory_space<vmem>>, vector<1x128xf32>
    %cst = arith.constant dense<0.000000e+00> : vector<16x128xf32>
    %5 = tpu.matmul %1, %3, %cst {dimension_numbers = #tpu.dot_dimension_numbers<[1], [0], [0], [1], [0, 0, 1, 1], [], []>} : vector<16x128xf32>, vector<128x128xf32>, vector<16x128xf32> -> vector<16x128xf32>
    %cst_9 = arith.constant dense<0.000000e+00> : vector<16x128xf32>
    %6 = tpu.matmul %0, %5, %cst_9 {dimension_numbers = #tpu.dot_dimension_numbers<[1], [0], [0], [1], [0, 0, 1, 1], [], []>} : vector<16x16xf32>, vector<16x128xf32>, vector<16x128xf32> -> vector<16x128xf32>
    %cst_10 = arith.constant dense<0.000000e+00> : vector<16x128xf32>
    %7 = tpu.matmul %1, %2, %cst_10 {dimension_numbers = #tpu.dot_dimension_numbers<[1], [0], [0], [1], [0, 0, 1, 1], [], []>} : vector<16x128xf32>, vector<128x128xf32>, vector<16x128xf32> -> vector<16x128xf32>
    %8 = arith.addf %7, %6 : vector<16x128xf32>
    %9 = vector.broadcast %4 : vector<1x128xf32> to vector<16x128xf32>
    %10 = arith.addf %8, %9 : vector<16x128xf32>
    %cst_11 = arith.constant 0.000000e+00 : f32
    %11 = vector.broadcast %cst_11 : f32 to vector<16x128xf32>
    %12 = arith.maximumf %10, %11 : vector<16x128xf32>
    %c0_12 = arith.constant 0 : index
    %c0_13 = arith.constant 0 : index
    %13 = vector.load %arg5[%c0_12, %c0_13] : memref<128x128xf32, #tpu.memory_space<vmem>>, vector<128x128xf32>
    %c0_14 = arith.constant 0 : index
    %c0_15 = arith.constant 0 : index
    %14 = vector.load %arg6[%c0_14, %c0_15] : memref<128x128xf32, #tpu.memory_space<vmem>>, vector<128x128xf32>
    %c0_16 = arith.constant 0 : index
    %c0_17 = arith.constant 0 : index
    %15 = vector.load %arg7[%c0_16, %c0_17] : memref<1x128xf32, #tpu.memory_space<vmem>>, vector<1x128xf32>
    %cst_18 = arith.constant dense<0.000000e+00> : vector<16x128xf32>
    %16 = tpu.matmul %12, %14, %cst_18 {dimension_numbers = #tpu.dot_dimension_numbers<[1], [0], [0], [1], [0, 0, 1, 1], [], []>} : vector<16x128xf32>, vector<128x128xf32>, vector<16x128xf32> -> vector<16x128xf32>
    %cst_19 = arith.constant dense<0.000000e+00> : vector<16x128xf32>
    %17 = tpu.matmul %0, %16, %cst_19 {dimension_numbers = #tpu.dot_dimension_numbers<[1], [0], [0], [1], [0, 0, 1, 1], [], []>} : vector<16x16xf32>, vector<16x128xf32>, vector<16x128xf32> -> vector<16x128xf32>
    %cst_20 = arith.constant dense<0.000000e+00> : vector<16x128xf32>
    %18 = tpu.matmul %12, %13, %cst_20 {dimension_numbers = #tpu.dot_dimension_numbers<[1], [0], [0], [1], [0, 0, 1, 1], [], []>} : vector<16x128xf32>, vector<128x128xf32>, vector<16x128xf32> -> vector<16x128xf32>
    %19 = arith.addf %18, %17 : vector<16x128xf32>
    %20 = vector.broadcast %15 : vector<1x128xf32> to vector<16x128xf32>
    %21 = arith.addf %19, %20 : vector<16x128xf32>
    %cst_21 = arith.constant 0.000000e+00 : f32
    %22 = vector.broadcast %cst_21 : f32 to vector<16x128xf32>
    %23 = arith.maximumf %21, %22 : vector<16x128xf32>
    %c0_22 = arith.constant 0 : index
    %c0_23 = arith.constant 0 : index
    %24 = vector.load %arg8[%c0_22, %c0_23] : memref<128x128xf32, #tpu.memory_space<vmem>>, vector<128x128xf32>
    %c0_24 = arith.constant 0 : index
    %c0_25 = arith.constant 0 : index
    %25 = vector.load %arg9[%c0_24, %c0_25] : memref<128x128xf32, #tpu.memory_space<vmem>>, vector<128x128xf32>
    %c0_26 = arith.constant 0 : index
    %c0_27 = arith.constant 0 : index
    %26 = vector.load %arg10[%c0_26, %c0_27] : memref<1x128xf32, #tpu.memory_space<vmem>>, vector<1x128xf32>
    %cst_28 = arith.constant dense<0.000000e+00> : vector<16x128xf32>
    %27 = tpu.matmul %23, %25, %cst_28 {dimension_numbers = #tpu.dot_dimension_numbers<[1], [0], [0], [1], [0, 0, 1, 1], [], []>} : vector<16x128xf32>, vector<128x128xf32>, vector<16x128xf32> -> vector<16x128xf32>
    %cst_29 = arith.constant dense<0.000000e+00> : vector<16x128xf32>
    %28 = tpu.matmul %0, %27, %cst_29 {dimension_numbers = #tpu.dot_dimension_numbers<[1], [0], [0], [1], [0, 0, 1, 1], [], []>} : vector<16x16xf32>, vector<16x128xf32>, vector<16x128xf32> -> vector<16x128xf32>
    %cst_30 = arith.constant dense<0.000000e+00> : vector<16x128xf32>
    %29 = tpu.matmul %23, %24, %cst_30 {dimension_numbers = #tpu.dot_dimension_numbers<[1], [0], [0], [1], [0, 0, 1, 1], [], []>} : vector<16x128xf32>, vector<128x128xf32>, vector<16x128xf32> -> vector<16x128xf32>
    %30 = arith.addf %29, %28 : vector<16x128xf32>
    %31 = vector.broadcast %26 : vector<1x128xf32> to vector<16x128xf32>
    %32 = arith.addf %30, %31 : vector<16x128xf32>
    %c0_31 = arith.constant 0 : index
    %c0_32 = arith.constant 0 : index
    %33 = vector.load %arg13[%c0_31, %c0_32] : memref<16x128xf32, #tpu.memory_space<vmem>>, vector<16x128xf32>
    tpu.vector_store %arg13[%c0_31, %c0_32], %32 {strides = array<i32>} : memref<16x128xf32, #tpu.memory_space<vmem>>, vector<16x128xf32>,
    %34 = tpu.iota {dimensions = array<i32: 0>} : vector<16x1xi32>
    %c16_i32 = arith.constant 16 : i32
    %35 = vector.broadcast %c16_i32 : i32 to vector<16x1xi32>
    %36 = arith.cmpi slt, %34, %35 : vector<16x1xi32>
    %cst_33 = arith.constant 0.000000e+00 : f32
    %37 = vector.shape_cast %36 : vector<16x1xi1> to vector<16x1xi1>
    %38 = vector.broadcast %37 : vector<16x1xi1> to vector<16x128xi1>
    %39 = vector.broadcast %cst_33 : f32 to vector<16x128xf32>
    %40 = arith.select %38, %32, %39 : vector<16x128xi1>, vector<16x128xf32>
    %cst_34 = arith.constant dense<0.000000e+00> : vector<128xf32>
    %41 = vector.multi_reduction <add>, %40, %cst_34 [0] : vector<16x128xf32> to vector<128xf32>
    %42 = vector.shape_cast %41 : vector<128xf32> to vector<1x128xf32>
    %cst_35 = arith.constant 6.250000e-02 : f32
    %43 = vector.broadcast %cst_35 : f32 to vector<1x128xf32>
    %44 = arith.mulf %42, %43 : vector<1x128xf32>
    %c0_36 = arith.constant 0 : index
    %c0_37 = arith.constant 0 : index
    %45 = vector.load %arg14[%c0_36, %c0_37] : memref<1x128xf32, #tpu.memory_space<vmem>>, vector<1x128xf32>
    tpu.vector_store %arg14[%c0_36, %c0_37], %44 {strides = array<i32>} : memref<1x128xf32, #tpu.memory_space<vmem>>, vector<1x128xf32>,
    %c0_38 = arith.constant 0 : index
    %c0_39 = arith.constant 0 : index
    %46 = vector.load %arg11[%c0_38, %c0_39] : memref<128x128xf32, #tpu.memory_space<vmem>>, vector<128x128xf32>
    %cst_40 = arith.constant dense<0.000000e+00> : vector<1x128xf32>
    %47 = tpu.matmul %44, %46, %cst_40 {dimension_numbers = #tpu.dot_dimension_numbers<[1], [0], [0], [1], [0, 0, 1, 1], [], []>} : vector<1x128xf32>, vector<128x128xf32>, vector<1x128xf32> -> vector<1x128xf32>
    %c0_41 = arith.constant 0 : index
    %c0_42 = arith.constant 0 : index
    %48 = vector.load %arg12[%c0_41, %c0_42] : memref<1x128xf32, #tpu.memory_space<vmem>>, vector<1x128xf32>
    %49 = arith.addf %47, %48 : vector<1x128xf32>
    %c0_43 = arith.constant 0 : index
    %c0_44 = arith.constant 0 : index
    %50 = vector.load %arg15[%c0_43, %c0_44] : memref<1x128xf32, #tpu.memory_space<vmem>>, vector<1x128xf32>
    tpu.vector_store %arg15[%c0_43, %c0_44], %49 {strides = array<i32>} : memref<1x128xf32, #tpu.memory_space<vmem>>, vector<1x128xf32>,
    return
  }
}

</mosaic_0001>

<bundles_post_ra>
// kernel: tpu_custom_call.1
= control target key start
LH: loop header
LB: loop body
LE: loop exit
PB: predicated region body
PF: predicated region fallthrough
CT: control target
= control target key end

     0   :  { %21 = vsyncpa [#allocation3], 0  ;;  %s2440_s0 = inlined_call_operand.hbm [shape: f32[16,16], index: 0, kind: input, shape index: {}]   ;;  %s2441_s1 = inlined_call_operand.hbm [shape: f32[16,128], index: 1, kind: input, shape index: {}]   ;;  %s2442_s2 = inlined_call_operand.hbm [shape: f32[128,128], index: 2, kind: input, shape index: {}]   ;;  %s2443_s3 = inlined_call_operand.hbm [shape: f32[128,128], index: 3, kind: input, shape index: {}]   ;;  %s2444_s4 = inlined_call_operand.vmem [shape: f32[1,128], index: 4, kind: input, shape index: {}]   ;;  %s2445_s5 = inlined_call_operand.hbm [shape: f32[128,128], index: 5, kind: input, shape index: {}]   ;;  %s2446_s6 = inlined_call_operand.hbm [shape: f32[128,128], index: 6, kind: input, shape index: {}]   ;;  %s2447_s7 = inlined_call_operand.vmem [shape: f32[1,128], index: 7, kind: input, shape index: {}]   ;;  %s2448_s8 = inlined_call_operand.hbm [shape: f32[128,128], index: 8, kind: input, shape index: {}]   ;;  %s2449_s9 = inlined_call_operand.hbm [shape: f32[128,128], index: 9, kind: input, shape index: {}]   ;;  %s2450_s10 = inlined_call_operand.vmem [shape: f32[1,128], index: 10, kind: input, shape index: {}]   ;;  %s2451_s11 = inlined_call_operand.hbm [shape: f32[128,128], index: 11, kind: input, shape index: {}]   ;;  %s2452_s12 = inlined_call_operand.vmem [shape: f32[1,128], index: 12, kind: input, shape index: {}]   ;;  %s2453_s13 = inlined_call_operand.hbm [shape: f32[16,128], index: 13, kind: output, shape index: {0}]   ;;  %s2454_s14 = inlined_call_operand.hbm [shape: f32[1,128], index: 14, kind: output, shape index: {1}]   ;;  %s2455_s15 = inlined_call_operand.hbm [shape: f32[1,128], index: 15, kind: output, shape index: {2}]  }
   0x1   :  { %22 = vsyncpa [#allocation6], 0 }
   0x2   :  { %23 = vsyncpa [#allocation9], 0 }
   0x3   :  { %24 = vsyncpa [#allocation12], 0 }
   0x4   :  { %25 = vsyncpa [#allocation15], 0 }
   0x5   :  { %26 = vsyncpa [#allocation4], 0 }
   0x6   :  { %27 = vsyncpa [#allocation19], 0  ;;  %s2083_s18 = smov [#allocation5]   ;;  %s2084_s20 = smov [#allocation8]  }
   0x7   :  { %s45_s19 = sshll.u32 %s2083_s18, 4  ;;  %s69_s21 = sshll.u32 %s2084_s20, 4  ;;  %s46_s19 = int_to_ptr.vmem [resolvable:$true] %s45_s19  ;;  %s2180_s21 = int_to_ptr.vmem [resolvable:$true] %s69_s21 }
   0x8   :  { %s1805_s24 = scalar_lea.hbm %s2441_s1, 256 }
   0x9   :  { %p1806_p0 = scmp.ne.s32.totalorder %s2441_s1, %s1805_s24  ;;  %p1809_p1 = scmp.lt.u32.totalorder %s1805_s24, %s2441_s1 }
   0xb   :  { %p1811_p2 = pnand %p1809_p1, %p1806_p0 }
   0xd   :  { %1814 = shalt.err (!%p1811_p2)
}
   0xe   :  { %s1815_s29 = scalar_lea.vmem %s46_s19, 256  ;;  %p1820_p4 = scmp.lt.s32.totalorder %s46_s19, %s46_s19 }
   0xf   :  { %p1816_p3 = scmp.ne.s32.totalorder %s46_s19, %s1815_s29  ;;  %p1821_p5 = scmp.lt.s32.totalorder %s1815_s29, %s1815_s29 }
  0x11   :  { %p1822_p6 = por %p1821_p5, %p1820_p4 }
  0x13   :  { %p1823_p7 = pnand %p1822_p6, %p1816_p3 }
  0x15   :  { %1826 = shalt.err (!%p1823_p7)
}
  0x16   :  { %s2085_s30 = smov 128   ;;  %s2086_s16 = smov 8  }
  0x17   :  { %51 = dma.hbm_to_vmem [thread:$0]  %s2441_s1, 256, %s46_s19, [#allocation6], %s2085_s30, %s2085_s30, %s2086_s16  }
  0x18   :  { %s1827_s23 = scalar_lea.hbm %s2443_s3, 2048 }
  0x19   :  { %p1828_p8 = scmp.ne.s32.totalorder %s2443_s3, %s1827_s23  ;;  %p1831_p9 = scmp.lt.u32.totalorder %s1827_s23, %s2443_s3 }
  0x1b   :  { %p1833_p10 = pnand %p1831_p9, %p1828_p8 }
  0x1d   :  { %1836 = shalt.err (!%p1833_p10)
}
  0x1e   :  { %s1837_s28 = scalar_lea.vmem %s2180_s21, 2048  ;;  %p1842_p12 = scmp.lt.s32.totalorder %s2180_s21, %s2180_s21 }
  0x1f   :  { %p1838_p11 = scmp.ne.s32.totalorder %s2180_s21, %s1837_s28  ;;  %p1843_p13 = scmp.lt.s32.totalorder %s1837_s28, %s1837_s28 }
  0x21   :  { %p1844_p0 = por %p1843_p13, %p1842_p12 }
  0x23   :  { %p1845_p1 = pnand %p1844_p0, %p1838_p11 }
  0x25   :  { %1848 = shalt.err (!%p1845_p1)
}
  0x26   :  { %75 = dma.hbm_to_vmem [thread:$0]  %s2443_s3, 2048, %s2180_s21, [#allocation9], %s2085_s30, %s2085_s30, %s2086_s16  }
  0x27   :  { %s2087_s29 = smov [#allocation11]   ;;  %s2088_s18 = smov [#allocation14]  }
  0x28   :  { %s95_s17 = sshll.u32 %s2087_s29, 4  ;;  %s121_s20 = sshll.u32 %s2088_s18, 4  ;;  %s96_s17 = int_to_ptr.vmem [resolvable:$true] %s95_s17  ;;  %s2217_s20 = int_to_ptr.vmem [resolvable:$true] %s121_s20 }
  0x29   :  { %s1849_s24 = scalar_lea.hbm %s2446_s6, 2048 }
  0x2a   :  { %p1850_p2 = scmp.ne.s32.totalorder %s2446_s6, %s1849_s24  ;;  %p1853_p3 = scmp.lt.u32.totalorder %s1849_s24, %s2446_s6 }
  0x2c   :  { %p1855_p4 = pnand %p1853_p3, %p1850_p2 }
  0x2e   :  { %1858 = shalt.err (!%p1855_p4)
}
  0x2f   :  { %s1859_s3 = scalar_lea.vmem %s96_s17, 2048  ;;  %p1864_p6 = scmp.lt.s32.totalorder %s96_s17, %s96_s17 }
  0x30   :  { %p1860_p5 = scmp.ne.s32.totalorder %s96_s17, %s1859_s3  ;;  %p1865_p7 = scmp.lt.s32.totalorder %s1859_s3, %s1859_s3 }
  0x32   :  { %p1866_p8 = por %p1865_p7, %p1864_p6 }
  0x34   :  { %p1867_p9 = pnand %p1866_p8, %p1860_p5 }
  0x36   :  { %1870 = shalt.err (!%p1867_p9)
}
  0x37   :  { %101 = dma.hbm_to_vmem [thread:$0]  %s2446_s6, 2048, %s96_s17, [#allocation12], %s2085_s30, %s2085_s30, %s2086_s16  }
  0x38   :  { %s1871_s18 = scalar_lea.hbm %s2449_s9, 2048 }
  0x39   :  { %p1872_p10 = scmp.ne.s32.totalorder %s2449_s9, %s1871_s18  ;;  %p1875_p11 = scmp.lt.u32.totalorder %s1871_s18, %s2449_s9 }
  0x3b   :  { %p1877_p12 = pnand %p1875_p11, %p1872_p10 }
  0x3d   :  { %1880 = shalt.err (!%p1877_p12)
}
  0x3e   :  { %s1881_s26 = scalar_lea.vmem %s2217_s20, 2048  ;;  %p1886_p0 = scmp.lt.s32.totalorder %s2217_s20, %s2217_s20 }
  0x3f   :  { %p1882_p13 = scmp.ne.s32.totalorder %s2217_s20, %s1881_s26  ;;  %p1887_p1 = scmp.lt.s32.totalorder %s1881_s26, %s1881_s26 }
  0x41   :  { %p1888_p2 = por %p1887_p1, %p1886_p0 }
  0x43   :  { %p1889_p3 = pnand %p1888_p2, %p1882_p13 }
  0x45   :  { %1892 = shalt.err (!%p1889_p3)
}
  0x46   :  { %127 = dma.hbm_to_vmem [thread:$0]  %s2449_s9, 2048, %s2217_s20, [#allocation15], %s2085_s30, %s2085_s30, %s2086_s16  }
  0x47   :  { %s2089_s27 = smov [#allocation2]   ;;  %s2090_s3 = smov [#allocation7]  }
  0x48   :  { %s33_s28 = sshll.u32 %s2089_s27, 4  ;;  %s57_s21 = sshll.u32 %s2090_s3, 4  ;;  %s34_s28 = int_to_ptr.vmem [resolvable:$true] %s33_s28  ;;  %s2254_s21 = int_to_ptr.vmem [resolvable:$true] %s57_s21 }
  0x49   :  { %s1893_s29 = scalar_lea.hbm %s2440_s0, 256 }
  0x4a   :  { %p1894_p4 = scmp.ne.s32.totalorder %s2440_s0, %s1893_s29  ;;  %p1897_p5 = scmp.lt.u32.totalorder %s1893_s29, %s2440_s0 }
  0x4c   :  { %p1899_p6 = pnand %p1897_p5, %p1894_p4 }
  0x4e   :  { %1902 = shalt.err (!%p1899_p6)
}
  0x4f   :  { %s1903_s9 = scalar_lea.vmem %s34_s28, 256  ;;  %p1908_p8 = scmp.lt.s32.totalorder %s34_s28, %s34_s28 }
  0x50   :  { %p1904_p7 = scmp.ne.s32.totalorder %s34_s28, %s1903_s9  ;;  %p1909_p9 = scmp.lt.s32.totalorder %s1903_s9, %s1903_s9 }
  0x52   :  { %p1910_p10 = por %p1909_p9, %p1908_p8 }
  0x54   :  { %p1911_p11 = pnand %p1910_p10, %p1904_p7 }
  0x56   :  { %1914 = shalt.err (!%p1911_p11)
}
  0x57   :  { %39 = dma.hbm_to_vmem [thread:$0]  %s2440_s0, 256, %s34_s28, [#allocation3], %s2085_s30, %s2085_s30, %s2086_s16  }
  0x58   :  { %s1915_s17 = scalar_lea.hbm %s2442_s2, 2048 }
  0x59   :  { %p1916_p12 = scmp.ne.s32.totalorder %s2442_s2, %s1915_s17  ;;  %p1919_p13 = scmp.lt.u32.totalorder %s1915_s17, %s2442_s2 }
  0x5b   :  { %p1921_p0 = pnand %p1919_p13, %p1916_p12 }
  0x5d   :  { %1924 = shalt.err (!%p1921_p0)
}
  0x5e   :  { %s1925_s29 = scalar_lea.vmem %s2254_s21, 2048  ;;  %p1930_p2 = scmp.lt.s32.totalorder %s2254_s21, %s2254_s21 }
  0x5f   :  { %p1926_p1 = scmp.ne.s32.totalorder %s2254_s21, %s1925_s29  ;;  %p1931_p3 = scmp.lt.s32.totalorder %s1925_s29, %s1925_s29 }
  0x61   :  { %p1932_p4 = por %p1931_p3, %p1930_p2 }
  0x63   :  { %p1933_p5 = pnand %p1932_p4, %p1926_p1 }
  0x65   :  { %1936 = shalt.err (!%p1933_p5)
}
  0x66   :  { %63 = dma.hbm_to_vmem [thread:$0]  %s2442_s2, 2048, %s2254_s21, [#allocation6], %s2085_s30, %s2085_s30, %s2086_s16  }
  0x67   :  { %s2091_s18 = smov [#allocation10]   ;;  %s2092_s23 = smov [#allocation13]  }
  0x68   :  { %s83_s22 = sshll.u32 %s2091_s18, 4  ;;  %s109_s24 = sshll.u32 %s2092_s23, 4  ;;  %s84_s22 = int_to_ptr.vmem [resolvable:$true] %s83_s22  ;;  %s2291_s24 = int_to_ptr.vmem [resolvable:$true] %s109_s24 }
  0x69   :  { %s1937_s25 = scalar_lea.hbm %s2445_s5, 2048 }
  0x6a   :  { %p1938_p6 = scmp.ne.s32.totalorder %s2445_s5, %s1937_s25  ;;  %p1941_p7 = scmp.lt.u32.totalorder %s1937_s25, %s2445_s5 }
  0x6c   :  { %p1943_p8 = pnand %p1941_p7, %p1938_p6 }
  0x6e   :  { %1946 = shalt.err (!%p1943_p8)
}
  0x6f   :  { %s1947_s2 = scalar_lea.vmem %s84_s22, 2048  ;;  %p1952_p10 = scmp.lt.s32.totalorder %s84_s22, %s84_s22 }
  0x70   :  { %p1948_p9 = scmp.ne.s32.totalorder %s84_s22, %s1947_s2  ;;  %p1953_p11 = scmp.lt.s32.totalorder %s1947_s2, %s1947_s2 }
  0x72   :  { %p1954_p12 = por %p1953_p11, %p1952_p10 }
  0x74   :  { %p1955_p13 = pnand %p1954_p12, %p1948_p9 }
  0x76   :  { %1958 = shalt.err (!%p1955_p13)
}
  0x77   :  { %89 = dma.hbm_to_vmem [thread:$0]  %s2445_s5, 2048, %s84_s22, [#allocation9], %s2085_s30, %s2085_s30, %s2086_s16  }
  0x78   :  { %s1959_s29 = scalar_lea.hbm %s2448_s8, 2048 }
  0x79   :  { %p1960_p0 = scmp.ne.s32.totalorder %s2448_s8, %s1959_s29  ;;  %p1963_p1 = scmp.lt.u32.totalorder %s1959_s29, %s2448_s8 }
  0x7b   :  { %p1965_p2 = pnand %p1963_p1, %p1960_p0 }
  0x7d   :  { %1968 = shalt.err (!%p1965_p2)
}
  0x7e   :  { %s1969_s9 = scalar_lea.vmem %s2291_s24, 2048  ;;  %p1974_p4 = scmp.lt.s32.totalorder %s2291_s24, %s2291_s24 }
  0x7f   :  { %p1970_p3 = scmp.ne.s32.totalorder %s2291_s24, %s1969_s9  ;;  %p1975_p5 = scmp.lt.s32.totalorder %s1969_s9, %s1969_s9 }
  0x81   :  { %p1976_p6 = por %p1975_p5, %p1974_p4 }
  0x83   :  { %p1977_p7 = pnand %p1976_p6, %p1970_p3 }
  0x85   :  { %1980 = shalt.err (!%p1977_p7)
}
  0x86   :  { %115 = dma.hbm_to_vmem [thread:$0]  %s2448_s8, 2048, %s2291_s24, [#allocation12], %s2085_s30, %s2085_s30, %s2086_s16  }
  0x87   :  { %s2093_s20 = smov [#allocation16]   ;;  %s1981_s17 = scalar_lea.hbm %s2451_s11, 2048 }
  0x88   :  { %s135_s25 = sshll.u32 %s2093_s20, 4  ;;  %p1982_p8 = scmp.ne.s32.totalorder %s2451_s11, %s1981_s17  ;;  %s136_s25 = int_to_ptr.vmem [resolvable:$true] %s135_s25 }
  0x89   :  { %p1985_p9 = scmp.lt.u32.totalorder %s1981_s17, %s2451_s11 }
  0x8b   :  { %p1987_p10 = pnand %p1985_p9, %p1982_p8 }
  0x8d   :  { %1990 = shalt.err (!%p1987_p10)
}
  0x8e   :  { %s1991_s1 = scalar_lea.vmem %s136_s25, 2048  ;;  %p1996_p12 = scmp.lt.s32.totalorder %s136_s25, %s136_s25 }
  0x8f   :  { %p1992_p11 = scmp.ne.s32.totalorder %s136_s25, %s1991_s1  ;;  %p1997_p13 = scmp.lt.s32.totalorder %s1991_s1, %s1991_s1 }
  0x91   :  { %p1998_p0 = por %p1997_p13, %p1996_p12 }
  0x93   :  { %p1999_p1 = pnand %p1998_p0, %p1992_p11 }
  0x95   :  { %2002 = shalt.err (!%p1999_p1)
}
  0x96   :  { %141 = dma.hbm_to_vmem [thread:$0]  %s2451_s11, 2048, %s136_s25, [#allocation15], %s2085_s30, %s2085_s30, %s2086_s16  }
  0x97   :  { %2069 = dma.done.wait [#allocation3], 256  }
  0x98   :  { %2070 = vsyncadd [#allocation3], 4294967040 }
  0x99   :  { %2071 = dma.done.wait [#allocation6], 2304  }
  0x9a   :  { %2072 = vsyncadd [#allocation6], 4294964992 }
  0x9b   :  { %2073 = dma.done.wait [#allocation9], 4096  }
  0x9c   :  { %2074 = vsyncadd [#allocation9], 4294963200 }
  0x9d   :  { %2075 = dma.done.wait [#allocation12], 4096  }
  0x9e   :  { %2076 = vsyncadd [#allocation12], 4294963200 }
  0x9f   :  { %2077 = dma.done.wait [#allocation15], 4096  }
  0xa0   :  { %2078 = vsyncadd [#allocation15], 4294963200  ;;  %v191_v0 = vld [vmem:[#allocation8] sm:$0xff]  ;;  %v192_v1 = vld [vmem:[#allocation8 + $0x8] sm:$0xff]  ;;  %vm283_vm0 = vcmask 130048   ;;  %vm2095_vm1 = vmmov 0  }
  0xa1   :  { %v193_v2 = vld [vmem:[#allocation8 + $0x10] sm:$0xff]  ;;  %v1554_v3 = vpack.c.bf16 %v192_v1, %v191_v0  ;;  %v194_v4 = vld [vmem:[#allocation8 + $0x18] sm:$0xff]  ;;  %v195_v6 = vld [vmem:[#allocation8 + $0x20] sm:$0xff]  ;;  %s2097_s28 = smov [#allocation18]  }
  0xa2   :  { %v1558_v5 = vpack.c.bf16 %v194_v4, %v193_v2  ;;  %v196_v7 = vld [vmem:[#allocation8 + $0x28] sm:$0xff]  ;;  %v2343_v9 = vld [vmem:[#allocation5] sm:$0xff]  ;;  %v198_v11 = vld [vmem:[#allocation8 + $0x38] sm:$0xff]  ;;  %s1112_s18 = sshll.u32 %s2097_s28, 4  ;;  %s1113_s18 = int_to_ptr.vmem [resolvable:$true] %s1112_s18 }
  0xa3   :  { %1555 = vmatprep.subr.bf16.mxu0 %v1554_v3  ;;  %v1562_v8 = vpack.c.bf16 %v196_v7, %v195_v6  ;;  %v197_v10 = vld [vmem:[#allocation8 + $0x30] sm:$0xff]  ;;  %1320 = vmatprep.mubr.f32.mxu0 %v2343_v9  ;;  %v199_v13 = vld [vmem:[#allocation8 + $0x40] sm:$0xff]  ;;  %v200_v14 = vld [vmem:[#allocation8 + $0x48] sm:$0xff]  ;;  %s2003_s9 = scalar_lea.vmem %s1113_s18, 16  ;;  %s2007_s5 = scalar_lea.vmem %s1113_s18, 32 }
  0xa4   :  { %1557 = vmatpush3.bf16.msra.mxu0 %v1554_v3  ;;  %v1566_v12 = vpack.c.bf16 %v198_v11, %v197_v10  ;;  %v1570_v15 = vpack.c.bf16 %v200_v14, %v199_v13  ;;  %v201_v16 = vld [vmem:[#allocation8 + $0x50] sm:$0xff]  ;;  %v202_v17 = vld [vmem:[#allocation8 + $0x58] sm:$0xff]  ;;  %v203_v19 = vld [vmem:[#allocation8 + $0x60] sm:$0xff]  ;;  %p2004_p2 = scmp.ne.s32.totalorder %s1113_s18, %s2003_s9  ;;  %p2008_p3 = scmp.lt.s32.totalorder %s1113_s18, %s1113_s18 }
  0xa5   :  { %1559 = vmatprep.subr.bf16.mxu0 %v1558_v5  ;;  %v1574_v18 = vpack.c.bf16 %v202_v17, %v201_v16  ;;  %v204_v20 = vld [vmem:[#allocation8 + $0x68] sm:$0xff]  ;;  %v205_v22 = vld [vmem:[#allocation8 + $0x70] sm:$0xff]  ;;  %v206_v23 = vld [vmem:[#allocation8 + $0x78] sm:$0xff]  ;;  %p2009_p4 = scmp.lt.s32.totalorder %s2007_s5, %s2003_s9 }
  0xa6   :  { %v1578_v21 = vpack.c.bf16 %v204_v20, %v203_v19  ;;  %v1582_v24 = vpack.c.bf16 %v206_v23, %v205_v22  ;;  %v2346_v25 = vld [vmem:[#allocation5 + $0x8] sm:$0xff]  ;;  %v2349_v26 = vld [vmem:[#allocation2] sm:$0xff]  ;;  %v467_v28 = vld [vmem:[#allocation11 + $0x8] sm:$0xff] }
  0xa7   :  { %1327 = vmatprep.mubr.msk.f32.mxu1 %vm283_vm0, %v2349_v26  ;;  %v466_v27 = vld [vmem:[#allocation11] sm:$0xff]  ;;  %v468_v29 = vld [vmem:[#allocation11 + $0x10] sm:$0xff]  ;;  %v469_v31 = vld [vmem:[#allocation11 + $0x18] sm:$0xff]  ;;  %p2010_p5 = por %p2009_p4, %p2008_p3 }
  0xa8   :  { %1561 = vmatpush3.bf16.msra.mxu0 %v1558_v5  ;;  %v1622_v30 = vpack.c.bf16 %v467_v28, %v466_v27  ;;  %v1626_v32 = vpack.c.bf16 %v469_v31, %v468_v29  ;;  %v470_v33 = vld [vmem:[#allocation11 + $0x20] sm:$0xff]  ;;  %v471_v34 = vld [vmem:[#allocation11 + $0x28] sm:$0xff]  ;;  %v472_v36 = vld [vmem:[#allocation11 + $0x30] sm:$0xff] }
  0xa9   :  { %1563 = vmatprep.subr.bf16.mxu0 %v1562_v8  ;;  %v1630_v35 = vpack.c.bf16 %v471_v34, %v470_v33  ;;  %v473_v37 = vld [vmem:[#allocation11 + $0x38] sm:$0xff]  ;;  %v474_v39 = vld [vmem:[#allocation11 + $0x40] sm:$0xff]  ;;  %v475_v40 = vld [vmem:[#allocation11 + $0x48] sm:$0xff]  ;;  %p2011_p6 = pnand %p2010_p5, %p2004_p2 }
  0xaa   :  { %v1634_v38 = vpack.c.bf16 %v473_v37, %v472_v36  ;;  %v1638_v41 = vpack.c.bf16 %v475_v40, %v474_v39  ;;  %v476_v42 = vld [vmem:[#allocation11 + $0x50] sm:$0xff]  ;;  %v477_v43 = vld [vmem:[#allocation11 + $0x58] sm:$0xff]  ;;  %v478_v45 = vld [vmem:[#allocation11 + $0x60] sm:$0xff] }
  0xab   :  { %v1642_v44 = vpack.c.bf16 %v477_v43, %v476_v42  ;;  %v479_v46 = vld [vmem:[#allocation11 + $0x68] sm:$0xff]  ;;  %v175_v48 = vld [vmem:[#allocation7] sm:$0xff]  ;;  %v177_v54 = vld [vmem:[#allocation7 + $0x10] sm:$0xff] }
  0xac   :  { %1565 = vmatpush3.bf16.msra.mxu0 %v1562_v8  ;;  %v1646_v47 = vpack.c.bf16 %v479_v46, %v478_v45  ;;  %v176_v49 = vld [vmem:[#allocation7 + $0x8] sm:$0xff]  ;;  %v178_v55 = vld [vmem:[#allocation7 + $0x18] sm:$0xff]  ;;  %v179_v58 = vld [vmem:[#allocation7 + $0x20] sm:$0xff] }
  0xad   :  { %1567 = vmatprep.subr.bf16.mxu0 %v1566_v12  ;;  %v1590_v53 = vpack.c.bf16 %v176_v49, %v175_v48  ;;  %v2353_v56 = vld [vmem:[#allocation2 + $0x8] sm:$0xff]  ;;  %v1594_v57 = vpack.c.bf16 %v178_v55, %v177_v54  ;;  %v181_v61 = vld [vmem:[#allocation7 + $0x30] sm:$0xff]  ;;  %v182_v62 = vld [vmem:[#allocation7 + $0x38] sm:$0xff] }
  0xae   :  { %v180_v59 = vld [vmem:[#allocation7 + $0x28] sm:$0xff]  ;;  %v1602_v63 = vpack.c.bf16 %v182_v62, %v181_v61  ;;  %v183_v0 = vld [vmem:[#allocation7 + $0x40] sm:$0xff]  ;;  %v185_v3 = vld [vmem:[#allocation7 + $0x50] sm:$0xff] }
  0xaf   :  { %v1598_v60 = vpack.c.bf16 %v180_v59, %v179_v58  ;;  %v184_v1 = vld [vmem:[#allocation7 + $0x48] sm:$0xff]  ;;  %v186_v4 = vld [vmem:[#allocation7 + $0x58] sm:$0xff]  ;;  %v187_v6 = vld [vmem:[#allocation7 + $0x60] sm:$0xff] }
  0xb0   :  { %1569 = vmatpush3.bf16.msra.mxu0 %v1566_v12  ;;  %v1606_v2 = vpack.c.bf16 %v184_v1, %v183_v0  ;;  %v1610_v5 = vpack.c.bf16 %v186_v4, %v185_v3  ;;  %v188_v7 = vld [vmem:[#allocation7 + $0x68] sm:$0xff]  ;;  %v190_v10 = vld [vmem:[#allocation7 + $0x78] sm:$0xff]  ;;  %v480_v12 = vld [vmem:[#allocation11 + $0x70] sm:$0xff] }
  0xb1   :  { %1571 = vmatprep.subr.bf16.mxu0 %v1570_v15  ;;  %v1614_v8 = vpack.c.bf16 %v188_v7, %v187_v6  ;;  %v481_v13 = vld [vmem:[#allocation11 + $0x78] sm:$0xff]  ;;  %v734_v22 = vld [vmem:[#allocation14] sm:$0xff]  ;;  %v735_v23 = vld [vmem:[#allocation14 + $0x8] sm:$0xff] }
  0xb2   :  { %v1650_v14 = vpack.c.bf16 %v481_v13, %v480_v12  ;;  %v737_v27 = vld [vmem:[#allocation14 + $0x18] sm:$0xff]  ;;  %v738_v29 = vld [vmem:[#allocation14 + $0x20] sm:$0xff]  ;;  %v743_v36 = vld [vmem:[#allocation14 + $0x48] sm:$0xff] }
  0xb3   :  { %v741_v33 = vld [vmem:[#allocation14 + $0x38] sm:$0xff]  ;;  %v747_v42 = vld [vmem:[#allocation14 + $0x68] sm:$0xff] }
  0xb4   :  { %1573 = vmatpush3.bf16.msra.mxu0 %v1570_v15  ;;  %v1144_v15 = vld [vmem:[%s2444_s4] ss:$0 sm:$0xff]  ;;  %v745_v39 = vld [vmem:[#allocation14 + $0x58] sm:$0xff]  ;;  %v451_v45 = vld [vmem:[#allocation10 + $0x8] sm:$0xff] }
  0xb5   :  { %1575 = vmatprep.subr.bf16.mxu0 %v1574_v18  ;;  %v455_v54 = vld [vmem:[#allocation10 + $0x28] sm:$0xff]  ;;  %v457_v58 = vld [vmem:[#allocation10 + $0x38] sm:$0xff] }
  0xb6   :  { %v459_v61 = vld [vmem:[#allocation10 + $0x48] sm:$0xff]  ;;  %v461_v0 = vld [vmem:[#allocation10 + $0x58] sm:$0xff] }
  0xb7   :  { %v463_v3 = vld [vmem:[#allocation10 + $0x68] sm:$0xff]  ;;  %v465_v6 = vld [vmem:[#allocation10 + $0x78] sm:$0xff] }
  0xb8   :  { %1577 = vmatpush3.bf16.msra.mxu0 %v1574_v18 }
  0xb9   :  { %1579 = vmatprep.subr.bf16.mxu0 %v1578_v21 }
  0xbc   :  { %1581 = vmatpush3.bf16.msra.mxu0 %v1578_v21 }
  0xbd   :  { %1583 = vmatprep.subr.bf16.mxu0 %v1582_v24 }
  0xc0   :  { %1585 = vmatpush3.bf16.msra.mxu0 %v1582_v24  ;;  %v736_v24 = vld [vmem:[#allocation14 + $0x10] sm:$0xff] }
  0xc1   :  { %1623 = vmatprep.subr.bf16.mxu0 %v1622_v30  ;;  %v1694_v28 = vpack.c.bf16 %v737_v27, %v736_v24  ;;  %v1010_v24 = vld [vmem:[#allocation16 + $0x20] sm:$0xff] }
  0xc3   :  { %1321 = vmatmul.mubr.f32.vlgmr.msra.gmra.mrb[0].mxu0 %v2346_v25 }
  0xc4   :  { %1625 = vmatpush3.bf16.msra.mxu0 %v1622_v30  ;;  %v739_v30 = vld [vmem:[#allocation14 + $0x28] sm:$0xff] }
  0xc5   :  { %1627 = vmatprep.subr.bf16.mxu0 %v1626_v32  ;;  %v1698_v31 = vpack.c.bf16 %v739_v30, %v738_v29  ;;  %v719_v29 = vld [vmem:[#allocation13 + $0x8] sm:$0xff] }
  0xc8   :  { %1629 = vmatpush3.bf16.msra.mxu0 %v1626_v32  ;;  %v740_v32 = vld [vmem:[#allocation14 + $0x30] sm:$0xff] }
  0xc9   :  { %1631 = vmatprep.subr.bf16.mxu0 %v1630_v35  ;;  %v1702_v34 = vpack.c.bf16 %v741_v33, %v740_v32 }
  0xcc   :  { %1633 = vmatpush3.bf16.msra.mxu0 %v1630_v35  ;;  %v742_v35 = vld [vmem:[#allocation14 + $0x40] sm:$0xff] }
  0xcd   :  { %1635 = vmatprep.subr.bf16.mxu0 %v1634_v38  ;;  %v1706_v37 = vpack.c.bf16 %v743_v36, %v742_v35  ;;  %v721_v35 = vld [vmem:[#allocation13 + $0x18] sm:$0xff] }
  0xd0   :  { %1637 = vmatpush3.bf16.msra.mxu0 %v1634_v38  ;;  %v744_v38 = vld [vmem:[#allocation14 + $0x50] sm:$0xff] }
  0xd1   :  { %1639 = vmatprep.subr.bf16.mxu0 %v1638_v41  ;;  %v1710_v40 = vpack.c.bf16 %v745_v39, %v744_v38  ;;  %v723_v38 = vld [vmem:[#allocation13 + $0x28] sm:$0xff] }
  0xd4   :  { %1641 = vmatpush3.bf16.msra.mxu0 %v1638_v41  ;;  %v746_v41 = vld [vmem:[#allocation14 + $0x60] sm:$0xff] }
  0xd5   :  { %1643 = vmatprep.subr.bf16.mxu0 %v1642_v44  ;;  %v1714_v43 = vpack.c.bf16 %v747_v42, %v746_v41  ;;  %v725_v41 = vld [vmem:[#allocation13 + $0x38] sm:$0xff] }
  0xd8   :  { %1645 = vmatpush3.bf16.msra.mxu0 %v1642_v44  ;;  %v450_v44 = vld [vmem:[#allocation10] sm:$0xff] }
  0xd9   :  { %1647 = vmatprep.subr.bf16.mxu0 %v1646_v47  ;;  %v1658_v49 = vpack.c.bf16 %v451_v45, %v450_v44  ;;  %v727_v44 = vld [vmem:[#allocation13 + $0x48] sm:$0xff] }
  0xdc   :  { %1649 = vmatpush3.bf16.msra.mxu0 %v1646_v47 }
  0xdd   :  { %1651 = vmatprep.subr.bf16.mxu0 %v1650_v14 }
  0xe0   :  { %1653 = vmatpush3.bf16.msra.mxu0 %v1650_v14 }
 0x196   :  { %v1322_v50 = vpop.f32.mrb[0].mxu0 }
 0x197   :  { %v274_v51 = vpop.f32.mrb[1].mxu0 }
 0x198   :  { %v1586_v52 = vpack.c.bf16 %v1322_v50, %v274_v51  ;;  %v452_v50 = vld [vmem:[#allocation10 + $0x10] sm:$0xff]  ;;  %v453_v51 = vld [vmem:[#allocation10 + $0x18] sm:$0xff] }
 0x19a   :  { %1587 = vmatprep.subr.bf16.mxu1 %v1586_v52 }
 0x19b   :  { %1589 = vmatpush3.bf16.msra.mxu1 %v1586_v52  ;;  %v1662_v52 = vpack.c.bf16 %v453_v51, %v452_v50  ;;  %v732_v51 = vld [vmem:[#allocation13 + $0x70] sm:$0xff] }
 0x19c   :  { %1591 = vmatprep.subr.bf16.mxu1 %v1590_v53 }
 0x19e   :  { %1328 = vmatmul.mubr.msk.f32.vlgmr.msra.gmra.mrb[0].mxu1 %vm283_vm0, %v2353_v56 }
 0x19f   :  { %1593 = vmatpush3.bf16.msra.mxu1 %v1590_v53  ;;  %1362 = vmatprep.mubr.f32.mxu1 %v2343_v9  ;;  %v189_v9 = vld [vmem:[#allocation7 + $0x70] sm:$0xff]  ;;  %v454_v53 = vld [vmem:[#allocation10 + $0x20] sm:$0xff] }
 0x1a0   :  { %1595 = vmatprep.subr.bf16.mxu1 %v1594_v57  ;;  %v1618_v11 = vpack.c.bf16 %v190_v10, %v189_v9  ;;  %v1666_v55 = vpack.c.bf16 %v455_v54, %v454_v53  ;;  %v749_v9 = vld [vmem:[#allocation14 + $0x78] sm:$0xff]  ;;  %v1012_v54 = vld [vmem:[#allocation16 + $0x30] sm:$0xff] }
 0x1a3   :  { %1597 = vmatpush3.bf16.msra.mxu1 %v1594_v57  ;;  %v456_v57 = vld [vmem:[#allocation10 + $0x30] sm:$0xff] }
 0x1a4   :  { %1599 = vmatprep.subr.bf16.mxu1 %v1598_v60  ;;  %v1670_v59 = vpack.c.bf16 %v457_v58, %v456_v57  ;;  %v1014_v58 = vld [vmem:[#allocation16 + $0x40] sm:$0xff] }
 0x1a7   :  { %1601 = vmatpush3.bf16.msra.mxu1 %v1598_v60  ;;  %v458_v60 = vld [vmem:[#allocation10 + $0x40] sm:$0xff] }
 0x1a8   :  { %1603 = vmatprep.subr.bf16.mxu1 %v1602_v63  ;;  %v1674_v62 = vpack.c.bf16 %v459_v61, %v458_v60  ;;  %v1016_v61 = vld [vmem:[#allocation16 + $0x50] sm:$0xff] }
 0x1ab   :  { %1605 = vmatpush3.bf16.msra.mxu1 %v1602_v63  ;;  %v460_v63 = vld [vmem:[#allocation10 + $0x50] sm:$0xff] }
 0x1ac   :  { %1607 = vmatprep.subr.bf16.mxu1 %v1606_v2  ;;  %v1678_v1 = vpack.c.bf16 %v461_v0, %v460_v63  ;;  %v1018_v0 = vld [vmem:[#allocation16 + $0x60] sm:$0xff] }
 0x1af   :  { %1609 = vmatpush3.bf16.msra.mxu1 %v1606_v2  ;;  %v462_v2 = vld [vmem:[#allocation10 + $0x60] sm:$0xff] }
 0x1b0   :  { %1611 = vmatprep.subr.bf16.mxu1 %v1610_v5  ;;  %v1682_v4 = vpack.c.bf16 %v463_v3, %v462_v2  ;;  %v1020_v3 = vld [vmem:[#allocation16 + $0x70] sm:$0xff] }
 0x1b3   :  { %1613 = vmatpush3.bf16.msra.mxu1 %v1610_v5  ;;  %v464_v5 = vld [vmem:[#allocation10 + $0x70] sm:$0xff] }
 0x1b4   :  { %1615 = vmatprep.subr.bf16.mxu1 %v1614_v8  ;;  %v1686_v7 = vpack.c.bf16 %v465_v6, %v464_v5  ;;  %v2096_v6 = vmov 0.0  }
 0x1b7   :  { %1617 = vmatpush3.bf16.msra.mxu1 %v1614_v8  ;;  %v748_v8 = vld [vmem:[#allocation14 + $0x70] sm:$0xff] }
 0x1b8   :  { %1619 = vmatprep.subr.bf16.mxu1 %v1618_v11  ;;  %v1718_v10 = vpack.c.bf16 %v749_v9, %v748_v8 }
 0x1bb   :  { %1621 = vmatpush3.bf16.msra.mxu1 %v1618_v11  ;;  %v1147_v11 = vld [vmem:[%s2447_s7] ss:$0 sm:$0xff] }
 0x1be   :  { %1363 = vmatmul.mubr.f32.vlgmr.msra.gmra.mrb[0].mxu1 %v2346_v25  ;;  %v1690_v25 = vpack.c.bf16 %v735_v23, %v734_v22  ;;  %v1009_v22 = vld [vmem:[#allocation16 + $0x18] sm:$0xff] }
 0x1bf   :  { %1404 = vmatprep.mubr.msk.f32.mxu1 %vm283_vm0, %v2349_v26 }
 0x1c0   :  { %1691 = vmatprep.subr.bf16.mxu0 %v1690_v25 }
 0x291   :  { %v1364_v16 = vpop.f32.mrb[0].mxu1 }
 0x292   :  { %v2364_v17 = vadd.f32 %v1364_v16, %v1144_v15  ;;  %v431_v18 = vpop.f32.mrb[1].mxu1 }
 0x293   :  { %v446_v19 = vadd.f32 %v1144_v15, %v431_v18  ;;  %v1007_v18 = vld [vmem:[#allocation16 + $0x8] sm:$0xff] }
 0x294   :  { %v449_v21 = vmax.f32 %v2364_v17, 0.0 }
 0x295   :  { %v448_v20 = vmax.f32 %v446_v19, 0.0  ;;  %v1008_v19 = vld [vmem:[#allocation16 + $0x10] sm:$0xff] }
 0x296   :  { %v1762_v23 = vpack.c.bf16 %v1009_v22, %v1008_v19 }
 0x297   :  { %1397 = vmatprep.mubr.f32.mxu0 %v448_v20 }
 0x298   :  { %1398 = vmatmul.mubr.f32.vlgmr.msra.gmra.mrb[2].mxu0 %v449_v21 }
 0x299   :  { %1693 = vmatpush3.bf16.msra.mxu0 %v1690_v25  ;;  %v1011_v25 = vld [vmem:[#allocation16 + $0x28] sm:$0xff] }
 0x29a   :  { %1695 = vmatprep.subr.bf16.mxu0 %v1694_v28  ;;  %v1765_v27 = vpack.c.bf16 %v1011_v25, %v1010_v24 }
 0x29d   :  { %1697 = vmatpush3.bf16.msra.mxu0 %v1694_v28  ;;  %v718_v28 = vld [vmem:[#allocation13] sm:$0xff] }
 0x29e   :  { %1699 = vmatprep.subr.bf16.mxu0 %v1698_v31  ;;  %v1726_v33 = vpack.c.bf16 %v719_v29, %v718_v28 }
 0x2a1   :  { %1701 = vmatpush3.bf16.msra.mxu0 %v1698_v31 }
 0x2a2   :  { %1703 = vmatprep.subr.bf16.mxu0 %v1702_v34 }
 0x2a5   :  { %1705 = vmatpush3.bf16.msra.mxu0 %v1702_v34  ;;  %v720_v34 = vld [vmem:[#allocation13 + $0x10] sm:$0xff] }
 0x2a6   :  { %1707 = vmatprep.subr.bf16.mxu0 %v1706_v37  ;;  %v1730_v36 = vpack.c.bf16 %v721_v35, %v720_v34 }
 0x2a9   :  { %1709 = vmatpush3.bf16.msra.mxu0 %v1706_v37  ;;  %v722_v37 = vld [vmem:[#allocation13 + $0x20] sm:$0xff] }
 0x2aa   :  { %1711 = vmatprep.subr.bf16.mxu0 %v1710_v40  ;;  %v1734_v39 = vpack.c.bf16 %v723_v38, %v722_v37 }
 0x2ad   :  { %1713 = vmatpush3.bf16.msra.mxu0 %v1710_v40  ;;  %v724_v40 = vld [vmem:[#allocation13 + $0x30] sm:$0xff] }
 0x2ae   :  { %1715 = vmatprep.subr.bf16.mxu0 %v1714_v43  ;;  %v1738_v42 = vpack.c.bf16 %v725_v41, %v724_v40 }
 0x2b1   :  { %1717 = vmatpush3.bf16.msra.mxu0 %v1714_v43  ;;  %v726_v43 = vld [vmem:[#allocation13 + $0x40] sm:$0xff] }
 0x2b2   :  { %1719 = vmatprep.subr.bf16.mxu0 %v1718_v10  ;;  %v1742_v45 = vpack.c.bf16 %v727_v44, %v726_v43 }
 0x2b5   :  { %1721 = vmatpush3.bf16.msra.mxu0 %v1718_v10 }
 0x36b   :  { %v1399_v46 = vpop.f32.mrb[2].mxu0 }
 0x36c   :  { %v549_v47 = vpop.f32.mrb[3].mxu0 }
 0x36d   :  { %v1654_v48 = vpack.c.bf16 %v1399_v46, %v549_v47  ;;  %v728_v46 = vld [vmem:[#allocation13 + $0x50] sm:$0xff]  ;;  %v729_v47 = vld [vmem:[#allocation13 + $0x58] sm:$0xff] }
 0x36f   :  { %1655 = vmatprep.subr.bf16.mxu1 %v1654_v48 }
 0x370   :  { %1657 = vmatpush3.bf16.msra.mxu1 %v1654_v48  ;;  %v1746_v48 = vpack.c.bf16 %v729_v47, %v728_v46 }
 0x371   :  { %1659 = vmatprep.subr.bf16.mxu1 %v1658_v49 }
 0x373   :  { %1405 = vmatmul.mubr.msk.f32.vlgmr.msra.gmra.mrb[2].mxu1 %vm283_vm0, %v2353_v56 }
 0x374   :  { %1661 = vmatpush3.bf16.msra.mxu1 %v1658_v49  ;;  %1439 = vmatprep.mubr.f32.mxu1 %v448_v20  ;;  %v2094_v20 = vmov 0.0|0.0   ;;  %v731_v49 = vld [vmem:[#allocation13 + $0x68] sm:$0xff] }
 0x375   :  { %1663 = vmatprep.subr.bf16.mxu1 %v1662_v52  ;;  %1758 = vmatprep.subr.bf16.mxu0 %v2094_v20 }
 0x378   :  { %1665 = vmatpush3.bf16.msra.mxu1 %v1662_v52  ;;  %v733_v52 = vld [vmem:[#allocation13 + $0x78] sm:$0xff] }
 0x379   :  { %1667 = vmatprep.subr.bf16.mxu1 %v1666_v55  ;;  %v1754_v53 = vpack.c.bf16 %v733_v52, %v732_v51 }
 0x37c   :  { %1669 = vmatpush3.bf16.msra.mxu1 %v1666_v55  ;;  %v1013_v55 = vld [vmem:[#allocation16 + $0x38] sm:$0xff] }
 0x37d   :  { %1671 = vmatprep.subr.bf16.mxu1 %v1670_v59  ;;  %v1768_v57 = vpack.c.bf16 %v1013_v55, %v1012_v54 }
 0x380   :  { %1673 = vmatpush3.bf16.msra.mxu1 %v1670_v59  ;;  %v1015_v59 = vld [vmem:[#allocation16 + $0x48] sm:$0xff] }
 0x381   :  { %1675 = vmatprep.subr.bf16.mxu1 %v1674_v62  ;;  %v1771_v60 = vpack.c.bf16 %v1015_v59, %v1014_v58 }
 0x384   :  { %1677 = vmatpush3.bf16.msra.mxu1 %v1674_v62  ;;  %v1017_v62 = vld [vmem:[#allocation16 + $0x58] sm:$0xff] }
 0x385   :  { %1679 = vmatprep.subr.bf16.mxu1 %v1678_v1  ;;  %v1774_v63 = vpack.c.bf16 %v1017_v62, %v1016_v61 }
 0x388   :  { %1681 = vmatpush3.bf16.msra.mxu1 %v1678_v1  ;;  %v1019_v1 = vld [vmem:[#allocation16 + $0x68] sm:$0xff] }
 0x389   :  { %1683 = vmatprep.subr.bf16.mxu1 %v1682_v4  ;;  %v1777_v2 = vpack.c.bf16 %v1019_v1, %v1018_v0 }
 0x38c   :  { %1685 = vmatpush3.bf16.msra.mxu1 %v1682_v4  ;;  %v1021_v4 = vld [vmem:[#allocation16 + $0x78] sm:$0xff] }
 0x38d   :  { %1687 = vmatprep.subr.bf16.mxu1 %v1686_v7  ;;  %v1780_v5 = vpack.c.bf16 %v1021_v4, %v1020_v3 }
 0x390   :  { %1689 = vmatpush3.bf16.msra.mxu1 %v1686_v7  ;;  %v1150_v7 = vld [vmem:[%s2450_s10] ss:$0 sm:$0xff]  ;;  %s2098_s10 = smov [#allocation17]  }
 0x391   :  { %s1099_s23 = sshll.u32 %s2098_s10, 4  ;;  %s1100_s23 = int_to_ptr.vmem [resolvable:$true] %s1099_s23 }
 0x393   :  { %1440 = vmatmul.mubr.f32.vlgmr.msra.gmra.mrb[2].mxu1 %v449_v21 }
 0x394   :  { %1481 = vmatprep.mubr.msk.f32.mxu1 %vm283_vm0, %v2349_v26  ;;  %v1006_v26 = vld [vmem:[#allocation16] sm:$0xff] }
 0x395   :  { %v1759_v21 = vpack.c.bf16 %v1007_v18, %v1006_v26 }
 0x466   :  { %v1441_v12 = vpop.f32.mrb[2].mxu1 }
 0x467   :  { %v2378_v13 = vadd.f32 %v1441_v12, %v1147_v11  ;;  %v699_v14 = vpop.f32.mrb[3].mxu1 }
 0x468   :  { %v714_v15 = vadd.f32 %v1147_v11, %v699_v14 }
 0x469   :  { %v717_v17 = vmax.f32 %v2378_v13, 0.0 }
 0x46a   :  { %v716_v16 = vmax.f32 %v714_v15, 0.0 }
 0x46c   :  { %1474 = vmatprep.mubr.f32.mxu0 %v716_v16 }
 0x46d   :  { %1475 = vmatmul.mubr.f32.vlgmr.msra.gmra.mrb[4].mxu0 %v717_v17 }
 0x46e   :  { %1760 = vmatpush3.bf16.msra.mxu0 %v1759_v21  ;;  %1551 = vmatprep.mubr.msk.f32.mxu0 %vm2095_vm1, %v2096_v6 }
 0x46f   :  { %1761 = vmatprep.subr.bf16.mxu0 %v2094_v20 }
 0x472   :  { %1763 = vmatpush3.bf16.msra.mxu0 %v1762_v23 }
 0x473   :  { %1764 = vmatprep.subr.bf16.mxu0 %v2094_v20 }
 0x476   :  { %1766 = vmatpush3.bf16.msra.mxu0 %v1765_v27 }
 0x477   :  { %1767 = vmatprep.subr.bf16.mxu0 %v2094_v20 }
 0x47a   :  { %1769 = vmatpush3.bf16.msra.mxu0 %v1768_v57 }
 0x47b   :  { %1770 = vmatprep.subr.bf16.mxu0 %v2094_v20 }
 0x47e   :  { %1772 = vmatpush3.bf16.msra.mxu0 %v1771_v60 }
 0x47f   :  { %1773 = vmatprep.subr.bf16.mxu0 %v2094_v20 }
 0x482   :  { %1775 = vmatpush3.bf16.msra.mxu0 %v1774_v63 }
 0x483   :  { %1776 = vmatprep.subr.bf16.mxu0 %v2094_v20 }
 0x486   :  { %1778 = vmatpush3.bf16.msra.mxu0 %v1777_v2 }
 0x487   :  { %1779 = vmatprep.subr.bf16.mxu0 %v2094_v20 }
 0x48a   :  { %1781 = vmatpush3.bf16.msra.mxu0 %v1780_v5 }
 0x540   :  { %v1476_v30 = vpop.f32.mrb[4].mxu0 }
 0x541   :  { %v817_v31 = vpop.f32.mrb[5].mxu0 }
 0x542   :  { %v1722_v32 = vpack.c.bf16 %v1476_v30, %v817_v31 }
 0x544   :  { %1723 = vmatprep.subr.bf16.mxu1 %v1722_v32 }
 0x545   :  { %1725 = vmatpush3.bf16.msra.mxu1 %v1722_v32 }
 0x546   :  { %1727 = vmatprep.subr.bf16.mxu1 %v1726_v33 }
 0x548   :  { %1482 = vmatmul.mubr.msk.f32.vlgmr.msra.gmra.mrb[4].mxu1 %vm283_vm0, %v2353_v56  ;;  %v730_v56 = vld [vmem:[#allocation13 + $0x60] sm:$0xff] }
 0x549   :  { %1729 = vmatpush3.bf16.msra.mxu1 %v1726_v33  ;;  %1516 = vmatprep.mubr.f32.mxu1 %v716_v16  ;;  %v1750_v50 = vpack.c.bf16 %v731_v49, %v730_v56 }
 0x54a   :  { %1731 = vmatprep.subr.bf16.mxu1 %v1730_v36 }
 0x54d   :  { %1733 = vmatpush3.bf16.msra.mxu1 %v1730_v36 }
 0x54e   :  { %1735 = vmatprep.subr.bf16.mxu1 %v1734_v39 }
 0x551   :  { %1737 = vmatpush3.bf16.msra.mxu1 %v1734_v39 }
 0x552   :  { %1739 = vmatprep.subr.bf16.mxu1 %v1738_v42 }
 0x555   :  { %1741 = vmatpush3.bf16.msra.mxu1 %v1738_v42 }
 0x556   :  { %1743 = vmatprep.subr.bf16.mxu1 %v1742_v45 }
 0x559   :  { %1745 = vmatpush3.bf16.msra.mxu1 %v1742_v45 }
 0x55a   :  { %1747 = vmatprep.subr.bf16.mxu1 %v1746_v48 }
 0x55d   :  { %1749 = vmatpush3.bf16.msra.mxu1 %v1746_v48 }
 0x55e   :  { %1751 = vmatprep.subr.bf16.mxu1 %v1750_v50 }
 0x561   :  { %1753 = vmatpush3.bf16.msra.mxu1 %v1750_v50 }
 0x562   :  { %1755 = vmatprep.subr.bf16.mxu1 %v1754_v53 }
 0x565   :  { %1757 = vmatpush3.bf16.msra.mxu1 %v1754_v53 }
 0x568   :  { %1517 = vmatmul.mubr.f32.vlgmr.msra.gmra.mrb[4].mxu1 %v717_v17 }
 0x63b   :  { %v1518_v8 = vpop.f32.mrb[4].mxu1 }
 0x63c   :  { %v983_v9 = vadd.f32 %v1518_v8, %v1150_v7  ;;  %v967_v10 = vpop.f32.mrb[5].mxu1 }
 0x63d   :  { %v982_v11 = vadd.f32 %v1150_v7, %v967_v10 }
 0x63e   :  { %985 = vst [vmem:[#allocation17 + $0x8] sm:$0xff] %v983_v9 }
 0x63f   :  { %984 = vst [vmem:[#allocation17] sm:$0xff] %v982_v11  ;;  %v997_v12 = vadd.f32 %v983_v9, %v982_v11 }
 0x641   :  { %v998_v13 = vrot.slane %v997_v12, 4 }
 0x643   :  { %v999_v14 = vadd.f32 %v998_v13, %v997_v12 }
 0x645   :  { %v1000_v15 = vrot.slane %v999_v14, 2 }
 0x647   :  { %v1001_v16 = vadd.f32 %v1000_v15, %v999_v14 }
 0x649   :  { %v1002_v17 = vrot.slane %v1001_v16, 1 }
 0x64b   :  { %v1003_v26 = vadd.f32 %v1002_v17, %v1001_v16 }
 0x64d   :  { %v1004_v18 = vmul.f32 0.0625, %v1003_v26 }
 0x64f   :  { %1552 = vmatmul.mubr.f32.vlgmr.msra.gmra.mrb[6].mxu0 %v1004_v18  ;;  %1005 = vst [vmem:[#allocation18] sm:$0x1] %v1004_v18 }
 0x650   :  { %2014 = shalt.err (!%p2011_p6)
}
 0x651   :  { %s2015_s25 = scalar_lea.hbm %s2454_s14, 16 }
 0x652   :  { %p2016_p7 = scmp.ne.s32.totalorder %s2454_s14, %s2015_s25  ;;  %p2019_p8 = scmp.lt.u32.totalorder %s2015_s25, %s2454_s14 }
 0x654   :  { %p2021_p9 = pnand %p2019_p8, %p2016_p7 }
 0x656   :  { %2024 = shalt.err (!%p2021_p9)
}
 0x657   :  { %1115 = dma.vmem_to_hbm [thread:$0]  %s1113_s18, 16, %s2454_s14, [#allocation19]  }
 0x658   :  { %s2025_s3 = scalar_lea.vmem %s1100_s23, 256  ;;  %p2030_p11 = scmp.lt.s32.totalorder %s1100_s23, %s1100_s23 }
 0x659   :  { %p2026_p10 = scmp.ne.s32.totalorder %s1100_s23, %s2025_s3  ;;  %p2031_p12 = scmp.lt.s32.totalorder %s2025_s3, %s2025_s3 }
 0x65b   :  { %p2032_p13 = por %p2031_p12, %p2030_p11 }
 0x65d   :  { %p2033_p0 = pnand %p2032_p13, %p2026_p10 }
 0x65f   :  { %2036 = shalt.err (!%p2033_p0)
}
 0x660   :  { %s2037_s24 = scalar_lea.hbm %s2453_s13, 256 }
 0x661   :  { %p2038_p1 = scmp.ne.s32.totalorder %s2453_s13, %s2037_s24  ;;  %p2041_p2 = scmp.lt.u32.totalorder %s2037_s24, %s2453_s13 }
 0x663   :  { %p2043_p3 = pnand %p2041_p2, %p2038_p1 }
 0x665   :  { %2046 = shalt.err (!%p2043_p3)
}
 0x666   :  { %1105 = dma.vmem_to_hbm [thread:$0]  %s1100_s23, 256, %s2453_s13, [#allocation4], %s2085_s30, %s2085_s30, %s2086_s16  }
 0x667   :  { %v1022_v19 = vld [vmem:[%s2452_s12] sm:$0x1]  ;;  %s2099_s18 = smov [#allocation20]  }
 0x668   :  { %s1122_s10 = sshll.u32 %s2099_s18, 4  ;;  %s1123_s10 = int_to_ptr.vmem [resolvable:$true] %s1122_s10 }
 0x669   :  { %s2047_s9 = scalar_lea.vmem %s1123_s10, 16  ;;  %s2051_s5 = scalar_lea.vmem %s1123_s10, 32 }
 0x66a   :  { %p2048_p4 = scmp.ne.s32.totalorder %s1123_s10, %s2047_s9  ;;  %p2052_p5 = scmp.lt.s32.totalorder %s1123_s10, %s1123_s10 }
 0x66b   :  { %p2053_p6 = scmp.lt.s32.totalorder %s2051_s5, %s2047_s9 }
 0x66d   :  { %p2054_p7 = por %p2053_p6, %p2052_p5 }
 0x66f   :  { %p2055_p8 = pnand %p2054_p7, %p2048_p4 }
 0x722   :  { %v1089_v20 = vpop.f32.mrb[6].mxu0 }
 0x723   :  { %v1090_v21 = vadd.f32 %v1089_v20, %v1022_v19  ;;  %v1553_v22 = vpop.f32.mrb[7].mxu0 }
 0x725   :  { %1093 = vst [vmem:[#allocation20] sm:$0x1] %v1090_v21 }
 0x726   :  { %2058 = shalt.err (!%p2055_p8)
}
 0x727   :  { %s2059_s16 = scalar_lea.hbm %s2455_s15, 16 }
 0x728   :  { %p2060_p9 = scmp.ne.s32.totalorder %s2455_s15, %s2059_s16  ;;  %p2063_p10 = scmp.lt.u32.totalorder %s2059_s16, %s2455_s15 }
 0x72a   :  { %p2065_p11 = pnand %p2063_p10, %p2060_p9 }
 0x72c   :  { %2068 = shalt.err (!%p2065_p11)
}
 0x72d   :  { %1125 = dma.vmem_to_hbm [thread:$0]  %s1123_s10, 16, %s2455_s15, [#allocation19]  }
 0x72e   :  { %2079 = dma.done.wait [#allocation4], 256  }
 0x72f   :  { %2080 = vsyncadd [#allocation4], 4294967040 }
 0x730   :  { %2081 = dma.done.wait [#allocation19], 32  }
 0x731   :  { %2082 = vsyncadd [#allocation19], 4294967264 }
 0x732   :  { %1135 = vsyncpa [#allocation3], 1 }
 0x733   :  { %1136 = vsyncpa [#allocation6], 1 }
 0x734   :  { %1137 = vsyncpa [#allocation9], 1 }
 0x735   :  { %1138 = vsyncpa [#allocation12], 1 }
 0x736   :  { %1139 = vsyncpa [#allocation15], 1 }
 0x737   :  { %1140 = vsyncpa [#allocation4], 1 }
 0x738   :  { %1141 = vsyncpa [#allocation19], 1 }

</bundles_post_ra>
